<compile_context>
chip_gen: v7x
topology: tpu7x:2x2x1
jax: 0.10.0
libtpu: 0.0.40
codegen_flags: <defaults>
</compile_context>

<pallas_src>
import functools

import jax
import jax.numpy as jnp
from jax.experimental import pallas as pl
from jax.experimental.pallas import tpu as pltpu

_NCORES = 2                      # parallel grid slices (v7x has 2 TCs; harmless on v5e/v6e)
_MAX_BLOCK_ELEMS = 2048 * 128    # ~1 MiB f32 per input per pipeline buffer


def _round_up(x, m):
    return (x + m - 1) // m * m


def _bce_loss_kernel(pt_ref, gt_ref, em_ref, out_ref, *,
                     blocks_per_core, block_rows, lane, n_valid_rows, needs_mask):
    c = pl.program_id(0)
    j = pl.program_id(1)

    @pl.when(j == 0)
    def _init():
        out_ref[...] = jnp.zeros_like(out_ref)

    # Elementwise hot path (exact torch semantics).
    pt = jnp.clip(pt_ref[...], 0.0001, 1.0 - 0.0001)
    gt = gt_ref[...]
    weighted = 1.0 + jnp.abs(em_ref[...])
    loss = (gt * jnp.log(pt) + (1.0 - gt) * jnp.log(1.0 - pt)) * weighted

    if needs_mask:
        # Zero out rows past the true extent (ragged tail / fully-phantom blocks).
        blk = c * blocks_per_core + j
        row = blk * block_rows + jax.lax.broadcasted_iota(
            jnp.int32, (block_rows, lane), 0)
        loss = jnp.where(row < n_valid_rows, loss, 0.0)

    # Lane-dense accumulation: fold groups of 8 sublanes together — pure VPU
    # vreg adds in the hot loop, no cross-lane XLU reduction per grid step.
    out_ref[...] += loss.reshape(block_rows // 8, 8, lane).sum(axis=0)


def improved_bce_loss(pt, gt, em):
    assert pt.shape == gt.shape == em.shape
    B, C, H, W = pt.shape
    total = B * C * H * W
    denom = float(total)

    # Copy-free 2D layout: prefer lane-dense [*, 128]; fall back to [B*C*H, W].
    lane = 128 if total % 128 == 0 else W
    rows = total // lane

    def as2d(x):
        return x.reshape(rows, lane).astype(jnp.float32)

    pt2, gt2, em2 = as2d(pt), as2d(gt), as2d(em)

    block_rows = min(_round_up(rows, 8),
                     max(8, (_MAX_BLOCK_ELEMS // lane) // 8 * 8))
    n_blocks = pl.cdiv(rows, block_rows)
    blocks_per_core = pl.cdiv(n_blocks, _NCORES)
    needs_mask = (_NCORES * blocks_per_core * block_rows) != rows

    def in_map(c, j):
        # Clamp phantom blocks (when n_blocks doesn't fill the grid) onto the
        # last real block; their contribution is masked to zero in-kernel.
        return (jnp.minimum(c * blocks_per_core + j, n_blocks - 1), 0)

    tile_spec = pl.BlockSpec((block_rows, lane), in_map)

    kernel = functools.partial(
        _bce_loss_kernel,
        blocks_per_core=blocks_per_core,
        block_rows=block_rows,
        lane=lane,
        n_valid_rows=rows,
        needs_mask=needs_mask)

    # One lane-dense (8, lane) partial-sum block per parallel slice.
    partials = pl.pallas_call(
        kernel,
        out_shape=jax.ShapeDtypeStruct((_NCORES * 8, lane), jnp.float32),
        grid_spec=pltpu.PrefetchScalarGridSpec(
            num_scalar_prefetch=0,
            grid=(_NCORES, blocks_per_core),
            in_specs=[tile_spec, tile_spec, tile_spec],
            out_specs=pl.BlockSpec((8, lane), lambda c, j: (c, 0)),
        ),
        compiler_params=pltpu.CompilerParams(
            dimension_semantics=("parallel", "arbitrary")),
    )(pt2, gt2, em2)

    return -(jnp.sum(partials) / denom)


def _reference(pt, gt, em):
    weighted = 1.0 + jnp.abs(em)
    ptc = jnp.clip(pt, 0.0001, 1.0 - 0.0001)
    loss_total = (gt * jnp.log(ptc) + (1.0 - gt) * jnp.log(1.0 - ptc)) * weighted
    return -(jnp.sum(loss_total) /
             (pt.shape[0] * pt.shape[1] * pt.shape[2] * pt.shape[3]))


if __name__ == "__main__":
    key = jax.random.PRNGKey(0)

    # Main case: lane-dense path (total % 128 == 0).
    k1, k2, k3 = jax.random.split(key, 3)
    B, C, H, W = 2, 4, 16, 16
    pt = jax.random.uniform(k1, (B, C, H, W), dtype=jnp.float32)
    gt = (jax.random.uniform(k2, (B, C, H, W)) > 0.5).astype(jnp.float32)
    em = jax.random.normal(k3, (B, C, H, W), dtype=jnp.float32)

    loss = jax.block_until_ready(improved_bce_loss(pt, gt, em))
    ref = jax.block_until_ready(_reference(pt, gt, em))
    assert jnp.allclose(loss, ref, rtol=1e-5, atol=1e-5), (loss, ref)

    # Ragged case: exercises the [B*C*H, W] layout + in-kernel tail masking.
    k4, k5, k6 = jax.random.split(jax.random.PRNGKey(1), 3)
    B2, C2, H2, W2 = 2, 3, 5, 7
    pt_b = jax.random.uniform(k4, (B2, C2, H2, W2), dtype=jnp.float32)
    gt_b = (jax.random.uniform(k5, (B2, C2, H2, W2)) > 0.5).astype(jnp.float32)
    em_b = jax.random.normal(k6, (B2, C2, H2, W2), dtype=jnp.float32)

    loss_b = jax.block_until_ready(improved_bce_loss(pt_b, gt_b, em_b))
    ref_b = jax.block_until_ready(_reference(pt_b, gt_b, em_b))
    assert jnp.allclose(loss_b, ref_b, rtol=1e-5, atol=1e-5), (loss_b, ref_b)

    print("KERNEL_OK")
</pallas_src>

<mosaic_0001>
module attributes {stable_mosaic.version = 11 : i64} {
  func.func @_bce_loss_kernel(%arg0: i32, %arg1: i32, %arg2: memref<16x128xf32, #tpu.memory_space<vmem>>, %arg3: memref<16x128xf32, #tpu.memory_space<vmem>>, %arg4: memref<16x128xf32, #tpu.memory_space<vmem>>, %arg5: memref<8x128xf32, #tpu.memory_space<vmem>>) attributes {dimension_semantics = [#tpu.dimension_semantics<parallel>, #tpu.dimension_semantics<arbitrary>], iteration_bounds = array<i64: 2, 1>, scalar_prefetch = 0 : i64, scratch_operands = 0 : i64, tpu.core_type = #tpu.core_type<tc>, window_params = [{transform_indices = @transform_0, window_bounds = array<i64: 16, 128>}, {transform_indices = @transform_1, window_bounds = array<i64: 16, 128>}, {transform_indices = @transform_2, window_bounds = array<i64: 16, 128>}, {transform_indices = @transform_3, window_bounds = array<i64: 8, 128>}]} {
    %c0_i32 = arith.constant 0 : i32
    %0 = arith.cmpi eq, %arg1, %c0_i32 : i32
    %1 = arith.extui %0 : i1 to i32
    %c0_i32_0 = arith.constant 0 : i32
    %2 = arith.cmpi ne, %1, %c0_i32_0 : i32
    scf.if %2 {
      %cst_17 = arith.constant 0.000000e+00 : f32
      %38 = vector.broadcast %cst_17 : f32 to vector<8x128xf32>
      %c0_18 = arith.constant 0 : index
      %c0_19 = arith.constant 0 : index
      %39 = vector.load %arg5[%c0_18, %c0_19] : memref<8x128xf32, #tpu.memory_space<vmem>>, vector<8x128xf32>
      tpu.vector_store %arg5[%c0_18, %c0_19], %38 {strides = array<i32>} : memref<8x128xf32, #tpu.memory_space<vmem>>, vector<8x128xf32>,
    } else {
    }
    %c0 = arith.constant 0 : index
    %c0_1 = arith.constant 0 : index
    %3 = vector.load %arg2[%c0, %c0_1] : memref<16x128xf32, #tpu.memory_space<vmem>>, vector<16x128xf32>
    %cst = arith.constant 9.99999974E-5 : f32
    %cst_2 = arith.constant 0.999899983 : f32
    %4 = vector.broadcast %cst : f32 to vector<16x128xf32>
    %5 = arith.maximumf %4, %3 : vector<16x128xf32>
    %6 = vector.broadcast %cst_2 : f32 to vector<16x128xf32>
    %7 = arith.minimumf %6, %5 : vector<16x128xf32>
    %c0_3 = arith.constant 0 : index
    %c0_4 = arith.constant 0 : index
    %8 = vector.load %arg3[%c0_3, %c0_4] : memref<16x128xf32, #tpu.memory_space<vmem>>, vector<16x128xf32>
    %c0_5 = arith.constant 0 : index
    %c0_6 = arith.constant 0 : index
    %9 = vector.load %arg4[%c0_5, %c0_6] : memref<16x128xf32, #tpu.memory_space<vmem>>, vector<16x128xf32>
    %10 = math.absf %9 : vector<16x128xf32>
    %cst_7 = arith.constant 1.000000e+00 : f32
    %11 = vector.broadcast %cst_7 : f32 to vector<16x128xf32>
    %12 = arith.addf %11, %10 : vector<16x128xf32>
    %13 = math.log %7 : vector<16x128xf32>
    %14 = arith.mulf %8, %13 : vector<16x128xf32>
    %cst_8 = arith.constant 1.000000e+00 : f32
    %15 = vector.broadcast %cst_8 : f32 to vector<16x128xf32>
    %16 = arith.subf %15, %8 : vector<16x128xf32>
    %cst_9 = arith.constant 1.000000e+00 : f32
    %17 = vector.broadcast %cst_9 : f32 to vector<16x128xf32>
    %18 = arith.subf %17, %7 : vector<16x128xf32>
    %19 = math.log %18 : vector<16x128xf32>
    %20 = arith.mulf %16, %19 : vector<16x128xf32>
    %21 = arith.addf %14, %20 : vector<16x128xf32>
    %22 = arith.mulf %21, %12 : vector<16x128xf32>
    %c1_i32 = arith.constant 1 : i32
    %23 = arith.muli %arg0, %c1_i32 : i32
    %24 = arith.addi %23, %arg1 : i32
    %c16_i32 = arith.constant 16 : i32
    %25 = arith.muli %24, %c16_i32 : i32
    %26 = tpu.iota {dimensions = array<i32: 0>} : vector<16x128xi32>
    %27 = vector.broadcast %25 : i32 to vector<16x128xi32>
    %28 = arith.addi %27, %26 : vector<16x128xi32>
    %c16_i32_10 = arith.constant 16 : i32
    %29 = vector.broadcast %c16_i32_10 : i32 to vector<16x128xi32>
    %30 = arith.cmpi slt, %28, %29 : vector<16x128xi32>
    %cst_11 = arith.constant 0.000000e+00 : f32
    %31 = vector.broadcast %cst_11 : f32 to vector<16x128xf32>
    %32 = arith.select %30, %22, %31 : vector<16x128xi1>, vector<16x128xf32>
    %c0_12 = arith.constant 0 : index
    %c0_13 = arith.constant 0 : index
    %33 = vector.load %arg5[%c0_12, %c0_13] : memref<8x128xf32, #tpu.memory_space<vmem>>, vector<8x128xf32>
    %34 = vector.shape_cast %32 : vector<16x128xf32> to vector<2x8x128xf32>
    %cst_14 = arith.constant dense<0.000000e+00> : vector<8x128xf32>
    %35 = vector.multi_reduction <add>, %34, %cst_14 [0] : vector<2x8x128xf32> to vector<8x128xf32>
    %36 = arith.addf %33, %35 : vector<8x128xf32>
    %c0_15 = arith.constant 0 : index
    %c0_16 = arith.constant 0 : index
    %37 = vector.load %arg5[%c0_15, %c0_16] : memref<8x128xf32, #tpu.memory_space<vmem>>, vector<8x128xf32>
    tpu.vector_store %arg5[%c0_15, %c0_16], %36 {strides = array<i32>} : memref<8x128xf32, #tpu.memory_space<vmem>>, vector<8x128xf32>,
    return
  }
  func.func @transform_0(%arg0: i32, %arg1: i32) -> (i32, i32) {
    %c1_i32 = arith.constant 1 : i32
    %0 = arith.muli %arg0, %c1_i32 : i32
    %1 = arith.addi %0, %arg1 : i32
    %c0_i32 = arith.constant 0 : i32
    %2 = arith.minsi %1, %c0_i32 : i32
    %c0_i32_0 = arith.constant 0 : i32
    %c0_i32_1 = arith.constant 0 : i32
    return %2, %c0_i32_0 : i32, i32
  }
  func.func @transform_1(%arg0: i32, %arg1: i32) -> (i32, i32) {
    %c1_i32 = arith.constant 1 : i32
    %0 = arith.muli %arg0, %c1_i32 : i32
    %1 = arith.addi %0, %arg1 : i32
    %c0_i32 = arith.constant 0 : i32
    %2 = arith.minsi %1, %c0_i32 : i32
    %c0_i32_0 = arith.constant 0 : i32
    %c0_i32_1 = arith.constant 0 : i32
    return %2, %c0_i32_0 : i32, i32
  }
  func.func @transform_2(%arg0: i32, %arg1: i32) -> (i32, i32) {
    %c1_i32 = arith.constant 1 : i32
    %0 = arith.muli %arg0, %c1_i32 : i32
    %1 = arith.addi %0, %arg1 : i32
    %c0_i32 = arith.constant 0 : i32
    %2 = arith.minsi %1, %c0_i32 : i32
    %c0_i32_0 = arith.constant 0 : i32
    %c0_i32_1 = arith.constant 0 : i32
    return %2, %c0_i32_0 : i32, i32
  }
  func.func @transform_3(%arg0: i32, %arg1: i32) -> (i32, i32) {
    %c0_i32 = arith.constant 0 : i32
    %c0_i32_0 = arith.constant 0 : i32
    return %arg0, %c0_i32 : i32, i32
  }
}

</mosaic_0001>

<bundles_post_ra>
// kernel: tpu_custom_call.1
= control target key start
LH: loop header
LB: loop body
LE: loop exit
PB: predicated region body
PF: predicated region fallthrough
CT: control target
= control target key end

     0   :  { %s1115_s0 = inlined_call_operand.hbm [shape: f32[16,128], index: 0, kind: input, shape index: {}]   ;;  %s1116_s1 = inlined_call_operand.hbm [shape: f32[16,128], index: 1, kind: input, shape index: {}]   ;;  %s1117_s2 = inlined_call_operand.hbm [shape: f32[16,128], index: 2, kind: input, shape index: {}]   ;;  %s1118_s3 = inlined_call_operand.hbm [shape: f32[16,128], index: 3, kind: output, shape index: {}]  }
   0x1   :  { %1125 = sst [smem:[#allocation15_spill]] %s1116_s1 }
   0x2   :  { %8 = vsyncpa [#allocation3], 0 }
   0x3   :  { %10 = vsyncpa [#allocation3 + $0x1], 0 }
   0x4   :  { %11 = vsyncpa [#allocation6], 0 }
   0x5   :  { %13 = vsyncpa [#allocation6 + $0x1], 0 }
   0x6   :  { %14 = vsyncpa [#allocation4], 0 }
   0x7   :  { %16 = vsyncpa [#allocation4 + $0x1], 0  ;;  %s865_s12 = smov 0   ;;  %s867_s13 = smov 0  }
   0x8   :  { %s869_s14 = smov 0   ;;  %s871_s15 = smov 0  }
   0x9   :  { %s873_s16 = smov 0   ;;  %s875_s17 = smov 0  }
   0xa   :  { %s877_s18 = smov 0   ;;  %s879_s19 = smov 0  }
   0xb LB: > { %1126 = sst [smem:[#allocation12_spill]] %s833_s18  ;;  %s904_s20 = sadd.s32 4294967295, %s837_s19   ;;  %s837_s19 = sphi %s879_s19, %s22_s19   ;;  %s833_s18 = sphi %s877_s18, %s1147_s18   ;;  %s829_s17 = sphi %s875_s17, %s1146_s17   ;;  %s825_s16 = sphi %s873_s16, %s1105_s16   ;;  %s821_s15 = sphi %s871_s15, %s1151_s15   ;;  %s817_s14 = sphi %s869_s14, %s1150_s14   ;;  %s813_s13 = sphi %s867_s13, %s1149_s13   ;;  %s809_s12 = sphi %s865_s12, %s1148_s12  }
   0xc   : > { %s508_s21 = sadd.s32 4294967294, %s837_s19   ;;  %s34_s22 = sadd.s32 1, %s833_s18 }
   0xd   : > { %p36_p0 = scmp.ge.s32.totalorder %s34_s22, 2  ;;  %p806_p1 = scmp.ne.s32.totalorder %s825_s16, 0 }
   0xe   : > { %p55_p2 = scmp.eq.s32.totalorder %s837_s19, 0  ;;  %p60_p3 = scmp.ne.s32.totalorder %s825_s16, %s821_s15 }
   0xf   : > { %s1153_s22 = smov (%p36_p0, %s34_s22), 0  ;;  %p61_p5 = scmp.eq.s32.totalorder %s904_s20, 0 }
  0x10   : > { %1127 = sst [smem:[#allocation13_spill]] %s1153_s22  ;;  %p913_p4 = por %p806_p1, %p55_p2 }
  0x11   : > { %p918_p6 = por %p61_p5, %p60_p3  ;;  %s134_s25 = ssub.s32 %s833_s18, %s1153_s22 }
  0x12   : > { %p135_p7 = scmp.eq.s32.totalorder %s134_s25, 0  ;;  %s137_s26 = sadd.s32 1, %s817_s14 }
  0x13   : > { %s1129_s24 = scalar_select %p918_p6, 1, 0 }
  0x14   : > { %s926_s27 = scalar_select %p135_p7, %s817_s14, %s137_s26  }
  0x15   : > { %p147_p8 = scmp.ne.s32.totalorder %s817_s14, %s813_s13  ;;  %p148_p9 = scmp.eq.s32.totalorder %s904_s20, 1 }
  0x16   : > { %1130 = sst [smem:[#allocation14_spill]] %s926_s27  ;;  %p153_p10 = scmp.ne.s32.totalorder %s813_s13, %s809_s12 }
  0x17   : > { %p154_p11 = scmp.eq.s32.totalorder %s508_s21, 1  ;;  %p933_p12 = por %p148_p9, %p147_p8 }
  0x18   : > { %p555_p1 = scmp.lt.s32.totalorder %s837_s19, 2  ;;  %s198_s4 = sand.u32 1, %s837_s19  }
  0x19   : > { %s1131_s28 = scalar_select %p933_p12, 1, 0 }
  0x1a   : > { %p938_p0 = por %p154_p11, %p153_p10  ;;  %p945_p2 = pnand %p555_p1, %p913_p4 }
  0x1b   : > { %s839_s5 = smov [#allocation5]   ;;  %s953_s7 = scalar_lea.sflag [#allocation6], %s198_s4 }
  0x1c   : > { %s1132_s29 = scalar_select %p938_p0, 1, 0 }
  0x1d   : > { %s1133_s30 = scalar_select %p945_p2, 1, 0 }
  0x1e   : > { %s212_s6 = sshll.u32 %s839_s5, 4  ;;  %s1134_s1 = sld [smem:[#allocation15_spill]]  ;;  %s950_s6 = int_to_ptr.vmem [resolvable:$true] %s212_s6 }
  0x1f   : > { %p963_p5 = pneg %p945_p2 }
  0x24   : > { %s640_s10 = scalar_lea.hbm %s1134_s1, 256 }
  0x25   : > { %p641_p4 = scmp.ne.s32.totalorder %s1134_s1, %s640_s10  ;;  %p647_p9 = scmp.lt.u32.totalorder %s640_s10, %s640_s10 }
  0x26   : > { %p649_p10 = scmp.lt.u32.totalorder %s640_s10, %s1134_s1 }
  0x27   : > { %p643_p7 = pnand %p963_p5, %p641_p4 }
  0x28   : > { %p650_p11 = por %p649_p10, %p647_p9 }
  0x29   : > { %p644_p8 = pneg %p643_p7 }
  0x2b   : > { %p651_p1 = pnand %p650_p11, %p644_p8 }
  0x2d   : > { %654 = shalt.err (!%p651_p1)
}
  0x2e   : > { %s655_s26 = scalar_lea.vmem %s950_s6, 256  ;;  %s662_s4 = scalar_lea.vmem %s950_s6, 512 }
  0x2f   : > { %p656_p13 = scmp.ne.s32.totalorder %s950_s6, %s655_s26  ;;  %p663_p4 = scmp.lt.s32.totalorder %s950_s6, %s950_s6 }
  0x30   : > { %p664_p7 = scmp.lt.s32.totalorder %s662_s4, %s655_s26 }
  0x31   : > { %p658_p3 = pnand %p656_p13, %p963_p5 }
  0x32   : > { %p665_p12 = por %p664_p7, %p663_p4 }
  0x33   : > { %p659_p0 = pneg %p658_p3 }
  0x35   : > { %p666_p6 = pnand %p665_p12, %p659_p0 }
  0x37   : > { %669 = shalt.err (!%p666_p6)
}
  0x38   : > { %s840_s5 = smov 128   ;;  %s841_s8 = smov 8  }
  0x39   : > { %547 = dma.hbm_to_vmem [thread:$0]  (!%p945_p2), %s1134_s1, 256, %s950_s6, %s953_s7, %s840_s5, %s840_s5, %s841_s8  }
  0x3a   : > { %p244_p13 = scmp.lt.s32.totalorder %s837_s19, 3  ;;  %p1136_p3 = scmp.ge.s32.totalorder %s837_s19, 1 }
  0x3b   : > { %s842_s15 = smov [#allocation2]   ;;  %s670_s4 = scalar_lea.hbm %s1115_s0, 256 }
  0x3c   : > { %p992_p12 = pnand %p1136_p3, %p244_p13  ;;  %s188_s23 = sshll.u32 %s842_s15, 4  ;;  %s189_s23 = int_to_ptr.vmem [resolvable:$true] %s188_s23 }
  0x3d   : > { %p671_p6 = scmp.ne.s32.totalorder %s1115_s0, %s670_s4  ;;  %p677_p9 = scmp.lt.u32.totalorder %s670_s4, %s670_s4 }
  0x3e   : > { %s1137_s11 = scalar_select %p992_p12, 1, 0 }
  0x3f   : > { %p673_p0 = pnand %p671_p6, %p963_p5  ;;  %p679_p10 = scmp.lt.u32.totalorder %s670_s4, %s1115_s0 }
  0x41   : > { %p674_p8 = pneg %p673_p0  ;;  %p680_p11 = por %p679_p10, %p677_p9 }
  0x43   : > { %p681_p1 = pnand %p680_p11, %p674_p8 }
  0x45   : > { %684 = shalt.err (!%p681_p1)
}
  0x46   : > { %s685_s10 = scalar_lea.vmem %s189_s23, 256  ;;  %s692_s15 = scalar_lea.vmem %s189_s23, 512 }
  0x47   : > { %p686_p4 = scmp.ne.s32.totalorder %s189_s23, %s685_s10  ;;  %p693_p3 = scmp.lt.s32.totalorder %s189_s23, %s189_s23 }
  0x48   : > { %p694_p12 = scmp.lt.s32.totalorder %s692_s15, %s685_s10 }
  0x49   : > { %p688_p7 = pnand %p686_p4, %p963_p5 }
  0x4a   : > { %p695_p2 = por %p694_p12, %p693_p3 }
  0x4b   : > { %p689_p13 = pneg %p688_p7 }
  0x4d   : > { %p696_p6 = pnand %p695_p2, %p689_p13 }
  0x4f   : > { %699 = shalt.err (!%p696_p6)
}
  0x50   : > { %p1138_p0 = scmp.ne.s32.totalorder %s1133_s30, 0  ;;  %s843_s25 = smov [#allocation7]  }
  0x51   : > { %s236_s26 = sshll.u32 %s843_s25, 4  ;;  %s700_s9 = scalar_lea.hbm %s1117_s2, 256  ;;  %s237_s26 = int_to_ptr.vmem [resolvable:$true] %s236_s26 }
  0x52   : > { %544 = dma.hbm_to_vmem [thread:$0]  (!%p1138_p0), %s1115_s0, 256, %s189_s23, [#allocation3], %s840_s5, %s840_s5, %s841_s8  }
  0x53   : > { %p701_p2 = scmp.ne.s32.totalorder %s1117_s2, %s700_s9  ;;  %p707_p9 = scmp.lt.u32.totalorder %s700_s9, %s700_s9 }
  0x54   : > { %p709_p10 = scmp.lt.u32.totalorder %s700_s9, %s1117_s2 }
  0x55   : > { %p703_p12 = pnand %p701_p2, %p963_p5 }
  0x56   : > { %p710_p11 = por %p709_p10, %p707_p9 }
  0x57   : > { %p704_p8 = pneg %p703_p12 }
  0x59   : > { %p711_p1 = pnand %p710_p11, %p704_p8 }
  0x5b   : > { %714 = shalt.err (!%p711_p1)
}
  0x5c   : > { %s715_s23 = scalar_lea.vmem %s237_s26, 256  ;;  %s722_s18 = scalar_lea.vmem %s237_s26, 512 }
  0x5d   : > { %p716_p4 = scmp.ne.s32.totalorder %s237_s26, %s715_s23  ;;  %p723_p3 = scmp.lt.s32.totalorder %s237_s26, %s237_s26 }
  0x5e   : > { %p724_p6 = scmp.lt.s32.totalorder %s722_s18, %s715_s23 }
  0x5f   : > { %p718_p7 = pnand %p716_p4, %p963_p5 }
  0x60   : > { %p725_p0 = por %p724_p6, %p723_p3 }
  0x61   : > { %p719_p13 = pneg %p718_p7 }
  0x63   : > { %p726_p2 = pnand %p725_p0, %p719_p13 }
  0x65   : > { %729 = shalt.err (!%p726_p2)
}
  0x66   : > { %p1139_p12 = scmp.ne.s32.totalorder %s1133_s30, 0  ;;  %p1140_p8 = scmp.ne.s32.totalorder %s1137_s11, 0 }
  0x67   : > { %s250_s21 = sand.u32 (!%p1140_p8), 1, %s825_s16   ;;  %p1141_p5 = scmp.ne.s32.totalorder (!%p1140_p8), %s1129_s24, 0 }
  0x68   : > { %550 = dma.hbm_to_vmem [thread:$0]  (!%p1139_p12), %s1117_s2, 256, %s237_s26, %s953_s7, %s840_s5, %s840_s5, %s841_s8  }
  0x69   : > { %248 = sbr.rel (%p1140_p8) target bundleno = 160 (0xa0), region = 32  ;;  %s1042_s22 = sshll.u32 (!%p1140_p8), %s250_s21, 4 }
  0x6a   : > { %s251_s25 = scalar_lea.sflag (!%p1140_p8), [#allocation3], %s250_s21  ;;  %s254_s4 = scalar_lea.vmem (!%p1140_p8), [#allocation2], %s1042_s22 }
  0x70   : > { %795 = dma.done.wait (%p1141_p5), %s251_s25, 256  }
  0x71   : > { %797 = vsyncadd (%p1141_p5), %s251_s25, 4294967040  ;;  %s259_s30 = sand.u32 1, %s904_s20   ;;  %s263_s5 = scalar_lea.vmem [#allocation5], %s1042_s22 }
  0x72   : > { %s260_s7 = scalar_lea.sflag [#allocation6], %s259_s30 }
  0x73   : > { %799 = dma.done.wait (%p1141_p5), %s260_s7, 512  }
  0x74   : > { %801 = vsyncadd (%p1141_p5), %s260_s7, 4294966784  ;;  %v322_v0 = vld [vmem:[%s254_s4] sm:$0xff]  ;;  %v323_v1 = vld [vmem:[%s254_s4 + $0x8] sm:$0xff]  ;;  %v358_v8 = vlaneseq  ;;  %s525_s20 = sshll.u32 %s829_s17, 4  ;;  %s272_s24 = scalar_lea.vmem [#allocation7], %s1042_s22 }
  0x75   : > { %v324_v2 = vmax.f32 %v322_v0, 0.0001  ;;  %v325_v3 = vmax.f32 %v323_v1, 0.0001  ;;  %v328_v10 = vld [vmem:[%s263_s5] sm:$0xff]  ;;  %v329_v12 = vld [vmem:[%s263_s5 + $0x8] sm:$0xff]  ;;  %v361_v15 = vstv %s525_s20 }
  0x76   : > { %v359_v9 = vshrl.u32 %v358_v8, 7  ;;  %v330_v11 = vld [vmem:[%s272_s24] sm:$0xff]  ;;  %v331_v13 = vld [vmem:[%s272_s24 + $0x8] sm:$0xff]  ;;  %v342_v19 = vsub.f32 1.0, %v328_v10  ;;  %v343_v24 = vsub.f32 1.0, %v329_v12  ;;  %s302_s8 = sand.u32 1, %s813_s13  }
  0x77   : > { %v326_v4 = vmin.f32 %v324_v2, 0.9999  ;;  %v327_v5 = vmin.f32 %v325_v3, 0.9999  ;;  %v332_v17 = vand.u32 2147483647, %v330_v11 }
  0x78   : > { %v360_v20 = vadd.s32 8, %v359_v9  ;;  %v333_v22 = vand.u32 2147483647, %v331_v13  ;;  %v362_v30 = vadd.s32 %v361_v15, %v359_v9  ;;  %s524_s11 = sshll.u32 %s302_s8, 3  ;;  %s527_s26 = sshll.u32 %s829_s17, 7 }
  0x79   : > { %632 = vlog2.f32 %v326_v4  ;;  %v344_v6 = vsub.f32 1.0, %v326_v4  ;;  %v345_v7 = vsub.f32 1.0, %v327_v5  ;;  %v334_v31 = vadd.f32 1.0, %v332_v17  ;;  %s304_s6 = scalar_lea.vmem [#allocation8], %s524_s11  ;;  %s1062_s23 = scalar_lea.hbm %s1118_s3, %s527_s26 }
  0x7a   : > { %634 = vlog2.f32 %v327_v5  ;;  %v363_v33 = vadd.s32 %v361_v15, %v360_v20  ;;  %v335_v34 = vadd.f32 1.0, %v333_v22  ;;  %vm364_vm0 = vcmp.lt.s32.totalorder %v362_v30, 16  ;;  %s386_s9 = sshll.u32 %s304_s6, 4  ;;  %s373_s18 = scalar_lea.sflag [#allocation4], %s302_s8  ;;  %s1064_s9 = int_to_ptr.vmem [resolvable:$true] %s386_s9 }
  0x7b   : > { %636 = vlog2.f32 %v344_v6  ;;  %s730_s1 = scalar_lea.vmem %s1064_s9, 128  ;;  %p1142_p9 = scmp.ne.s32.totalorder %s1131_s28, 0 }
  0x7c   : > { %638 = vlog2.f32 %v345_v7  ;;  %vm365_vm1 = vcmp.lt.s32.totalorder %v363_v33, 16  ;;  %p731_p0 = scmp.ne.s32.totalorder %s1064_s9, %s730_s1  ;;  %s844_s17 = smov [#allocation8]  }
  0x7d   : > { %s734_s27 = sshll.u32 %s844_s17, 4  ;;  %s735_s27 = int_to_ptr.vmem [resolvable:$false] %s734_s27 }
  0x7e   : > { %p732_p10 = pnand %p731_p0, %p1142_p9  ;;  %s736_s21 = scalar_lea.vmem %s735_s27, 256 }
  0x7f   : > { %p737_p1 = scmp.lt.s32.totalorder %s1064_s9, %s735_s27  ;;  %p738_p4 = scmp.lt.s32.totalorder %s736_s21, %s730_s1 }
  0x80   : > { %p733_p11 = pneg %p732_p10 }
  0x81   : > { %p739_p7 = por %p738_p4, %p737_p1 }
  0x83   : > { %v633_v14 = vpop.eup %632  ;;  %p740_p13 = pnand %p739_p7, %p733_p11 }
  0x84   : > { %v635_v16 = vpop.eup %634  ;;  %v337_v18 = vmul.f32 0.6931472, %v633_v14 }
  0x85   : > { %v637_v21 = vpop.eup %636  ;;  %v339_v23 = vmul.f32 0.6931472, %v635_v16 }
  0x86   : > { %v639_v25 = vpop.eup %638  ;;  %v340_v26 = vmul.f32 %v337_v18, %v328_v10  ;;  %v347_v27 = vmul.f32 0.6931472, %v637_v21 }
  0x87   : > { %v341_v28 = vmul.f32 %v339_v23, %v329_v12  ;;  %v349_v29 = vmul.f32 0.6931472, %v639_v25 }
  0x88   : > { %v350_v32 = vmul.f32 %v347_v27, %v342_v19 }
  0x89   : > { %v351_v35 = vmul.f32 %v349_v29, %v343_v24 }
  0x8a   : > { %v352_v36 = vadd.f32 %v350_v32, %v340_v26 }
  0x8b   : > { %v353_v37 = vadd.f32 %v351_v35, %v341_v28 }
  0x8c   : > { %v354_v38 = vmul.f32 %v352_v36, %v334_v31 }
  0x8d   : > { %v355_v39 = vmul.f32 %v353_v37, %v335_v34 }
  0x8e   : > { %v366_v40 = vsel %vm364_vm0, %v354_v38, 0.0 }
  0x8f   : > { %v367_v41 = vsel %vm365_vm1, %v355_v39, 0.0 }
  0x90   : > { %v369_v42 = vadd.f32 %v367_v41, %v366_v40 }
  0x92   : > { %371 = vst [vmem:[%s304_s6] sm:$0xff] %v369_v42 }
  0x93   : > { %743 = shalt.err (!%p740_p13)
}
  0x94   : > { %s744_s22 = scalar_lea.hbm %s1062_s23, 128  ;;  %s748_s30 = scalar_lea.hbm %s1118_s3, 256 }
  0x95   : > { %p745_p3 = scmp.ne.s32.totalorder %s1062_s23, %s744_s22  ;;  %p749_p12 = scmp.lt.u32.totalorder %s1062_s23, %s1118_s3 }
  0x96   : > { %p750_p8 = scmp.lt.u32.totalorder %s748_s30, %s744_s22  ;;  %p752_p0 = scmp.lt.u32.totalorder %s744_s22, %s1062_s23 }
  0x97   : > { %p746_p6 = pnand %p745_p3, %p1142_p9 }
  0x98   : > { %p751_p5 = por %p750_p8, %p749_p12 }
  0x99   : > { %p747_p2 = pneg %p746_p6 }
  0x9a   : > { %p753_p10 = por %p752_p0, %p751_p5 }
  0x9c   : > { %p754_p11 = pnand %p753_p10, %p747_p2 }
  0x9e   : > { %757 = shalt.err (!%p754_p11)
}
  0x9f   : > { %539 = dma.vmem_to_hbm [thread:$0]  (%p1142_p9), %s1064_s9, 128, %s1062_s23, %s373_s18  }
  0xa0 PF: > { %s398_s20 = sand.u32 1, %s809_s12   ;;  %p1143_p1 = scmp.ne.s32.totalorder %s1132_s29, 0 }
  0xa1   : > { %p1144_p4 = scmp.ge.s32.totalorder %s837_s19, 2  ;;  %s399_s24 = scalar_lea.sflag [#allocation4], %s398_s20 }
  0xa3   : > { %p552_p7 = pnand %p1144_p4, %p1143_p1 }
  0xa5   : > { %803 = dma.done.wait (!%p552_p7), %s399_s24, 128  }
  0xa6   : > { %805 = vsyncadd (!%p552_p7), %s399_s24, 4294967168  ;;  %s22_s19 = sadd.s32 1, %s837_s19   ;;  %s1145_s28 = sld [smem:[#allocation14_spill]] }
  0xa7   : > { %p19_p13 = scmp.ge.s32.totalorder %s22_s19, 4   ;;  %s1146_s17 = sld [smem:[#allocation12_spill]] }
  0xa8   : > { %s1147_s18 = sld [smem:[#allocation13_spill]]  ;;  %s1148_s12 = smov %s813_s13 }
  0xa9   : > { %s1149_s13 = smov %s817_s14  ;;  %s1151_s15 = smov %s825_s16 }
  0xaa   : > { %s1105_s16 = smov 0   ;;  %21 = sbr.rel (!%p19_p13) target bundleno = 11 (0xb), region = 105 }
  0xac   : > { %s1150_s14 = smov %s1145_s28 }
  0xb1   :  { %404 = vsyncpa [#allocation3], 1 }
  0xb2   :  { %406 = vsyncpa [#allocation3 + $0x1], 1 }
  0xb3   :  { %407 = vsyncpa [#allocation6], 1 }
  0xb4   :  { %409 = vsyncpa [#allocation6 + $0x1], 1 }
  0xb5   :  { %410 = vsyncpa [#allocation4], 1 }
  0xb6   :  { %412 = vsyncpa [#allocation4 + $0x1], 1 }

</bundles_post_ra>
